<compile_context>
chip_gen: v6e
topology: v6e:2x2x1
jax: 0.10.0
libtpu: 0.0.40
codegen_flags: <defaults>
</compile_context>

<pallas_src>
import functools

import jax
import jax.numpy as jnp
from jax.experimental import pallas as pl
from jax.experimental.pallas import tpu as pltpu

_LANE = 128
_SUBLANE = 8


def _round_up(n, m):
    return ((n + m - 1) // m) * m


def _mlp_kernel(*refs, num_layers, mxu_dtype):
    """Fused MLP forward.

    refs = (x_ref, w0_ref, b0_ref, w1_ref, b1_ref, ..., out_ref)
    Weights arrive in `mxu_dtype`; biases in f32 as (1, out).  All layers
    except the last are followed by ReLU.  Accumulation is always f32.
    """
    x_ref = refs[0]
    out_ref = refs[-1]
    param_refs = refs[1:-1]

    h = x_ref[...].astype(mxu_dtype)
    for layer in range(num_layers):
        w = param_refs[2 * layer][...]          # (in, out) mxu_dtype
        b = param_refs[2 * layer + 1][...]      # (1, out) f32 -> broadcasts
        h = jnp.dot(h, w, preferred_element_type=jnp.float32) + b
        if layer < num_layers - 1:
            h = jnp.maximum(h, 0.0).astype(mxu_dtype)   # ReLU, back to MXU dtype
    out_ref[...] = h.astype(out_ref.dtype)


def qnn_forward(x, weights, biases, *, batch_tile=4096, mxu_dtype=jnp.bfloat16):
    """Run the fused MLP Pallas kernel.

    x:        (batch, state_size) float32
    weights:  list of (in_features, out_features) float32 arrays
    biases:   list of (out_features,) float32 arrays
    returns:  (batch, action_size) float32
    """
    num_layers = len(weights)
    batch, state_size = x.shape
    action_size = weights[-1].shape[1]

    # Feature dims: keep the streamed input (state_size) and output
    # (action_size) at their true widths; pad only hidden dims to the lane
    # width (weights are VMEM-resident, so this is cheap and keeps the
    # intermediates lane-dense).
    feat = [state_size] + [w.shape[1] for w in weights]
    feat_p = list(feat)
    for i in range(1, num_layers):          # hidden layer outputs only
        feat_p[i] = _round_up(feat[i], _LANE)

    # Batch tiling: sublane-rounded tiles; ensure >= 2 parallel grid steps on
    # big batches so both v7x TensorCores are used.
    batch_r = _round_up(batch, _SUBLANE)
    tile_b = min(_round_up(batch_tile, _SUBLANE), batch_r)
    if batch_r >= 2048 and tile_b >= batch_r:
        tile_b = _round_up((batch_r + 1) // 2, _SUBLANE)
    batch_p = _round_up(batch, tile_b)
    grid_n = batch_p // tile_b

    x_p = x.astype(jnp.float32)
    if batch_p != batch:
        x_p = jnp.pad(x_p, ((0, batch_p - batch), (0, 0)))

    args = [x_p]
    param_bytes = 0
    flops = 0
    for i, (w, b) in enumerate(zip(weights, biases)):
        in_f, out_f = w.shape
        wp = jnp.pad(
            w.astype(jnp.float32),
            ((0, feat_p[i] - in_f), (0, feat_p[i + 1] - out_f)),
        ).astype(mxu_dtype)
        bp = jnp.pad(
            b.astype(jnp.float32).reshape(1, -1),
            ((0, 0), (0, feat_p[i + 1] - out_f)),
        )
        args.append(wp)
        args.append(bp)
        param_bytes += (feat_p[i] * feat_p[i + 1]) * jnp.dtype(mxu_dtype).itemsize
        param_bytes += feat_p[i + 1] * 4
        flops += 2 * batch_p * feat_p[i] * feat_p[i + 1]

    kernel = functools.partial(_mlp_kernel, num_layers=num_layers,
                               mxu_dtype=mxu_dtype)
    out_shape = jax.ShapeDtypeStruct((batch_p, action_size), jnp.float32)

    if grid_n == 1:
        # Small problem: single invocation, everything resident in VMEM.
        in_specs = [pl.BlockSpec(memory_space=pltpu.VMEM)] * len(args)
        out = pl.pallas_call(
            kernel,
            out_shape=out_shape,
            in_specs=in_specs,
            out_specs=pl.BlockSpec(memory_space=pltpu.VMEM),
        )(*args)
    else:
        # Large batch: stream (tile_b, state_size) input tiles and
        # (tile_b, action_size) output tiles at their true widths; keep the
        # (padded) weights/biases resident across the grid.
        in_specs = [pl.BlockSpec((tile_b, state_size), lambda gi: (gi, 0))]
        for i in range(num_layers):
            in_specs.append(
                pl.BlockSpec((feat_p[i], feat_p[i + 1]), lambda gi: (0, 0)))
            in_specs.append(
                pl.BlockSpec((1, feat_p[i + 1]), lambda gi: (0, 0)))
        bytes_accessed = (batch_p * state_size * 4
                          + batch_p * action_size * 4
                          + param_bytes)
        out = pl.pallas_call(
            kernel,
            out_shape=out_shape,
            grid=(grid_n,),
            in_specs=in_specs,
            out_specs=pl.BlockSpec((tile_b, action_size), lambda gi: (gi, 0)),
            compiler_params=pltpu.CompilerParams(
                dimension_semantics=("parallel",),
                vmem_limit_bytes=32 * 1024 * 1024,  # safe on v5e/v6e/v7x
            ),
            cost_estimate=pl.CostEstimate(
                flops=flops, transcendentals=0, bytes_accessed=bytes_accessed),
        )(*args)

    # Only padded batch rows need slicing off (output lanes are exact).
    return out[:batch] if batch_p != batch else out


def init_qnn_params(key, state_size, hidden_size, hidden_num, action_size):
    """Deterministic parameter init (uniform, same spirit as torch's default)."""
    dims = [state_size] + [hidden_size] * hidden_num + [action_size]
    weights, biases = [], []
    for i in range(len(dims) - 1):
        fan_in, fan_out = dims[i], dims[i + 1]
        key, kw, kb = jax.random.split(key, 3)
        bound = 1.0 / jnp.sqrt(jnp.float32(fan_in))
        # torch nn.Linear stores (out, in); we store transposed (in, out).
        w = jax.random.uniform(kw, (fan_in, fan_out), jnp.float32, -bound, bound)
        b = jax.random.uniform(kb, (fan_out,), jnp.float32, -bound, bound)
        weights.append(w)
        biases.append(b)
    return weights, biases


def qnn_reference(x, weights, biases):
    """Pure-JAX reference for correctness checking."""
    h = x
    for i, (w, b) in enumerate(zip(weights, biases)):
        h = h @ w + b
        if i < len(weights) - 1:
            h = jnp.maximum(h, 0.0)
    return h


if __name__ == "__main__":
    # Small, module-consistent shapes.
    state_size = 4
    action_size = 3
    hidden_size = 32
    hidden_num = 2       # -> 3 Linear layers total
    batch = 8

    key = jax.random.PRNGKey(0)
    key, kx, kx2 = jax.random.split(key, 3)
    x = jax.random.normal(kx, (batch, state_size), jnp.float32)

    weights, biases = init_qnn_params(
        key, state_size, hidden_size, hidden_num, action_size
    )

    # Small-batch path (grid=(), fully VMEM-resident), exact f32 math.
    out = qnn_forward(x, weights, biases, mxu_dtype=jnp.float32)
    out = jax.block_until_ready(out)
    ref = qnn_reference(x, weights, biases)
    assert out.shape == (batch, action_size)
    assert jnp.allclose(out, ref, atol=1e-5, rtol=1e-5), \
        "mismatch vs reference (small batch, f32)"

    # Large-batch path (1-D parallel grid over batch tiles, resident weights).
    big_batch = 1000  # non-multiple of tile -> exercises row padding too
    x_big = jax.random.normal(kx2, (big_batch, state_size), jnp.float32)
    ref_big = qnn_reference(x_big, weights, biases)

    # Grid path, exact f32 math.
    out_f32 = qnn_forward(x_big, weights, biases, batch_tile=256,
                          mxu_dtype=jnp.float32)
    out_f32 = jax.block_until_ready(out_f32)
    assert out_f32.shape == (big_batch, action_size)
    assert jnp.allclose(out_f32, ref_big, atol=1e-4, rtol=1e-4), \
        "mismatch vs reference (large batch, f32)"

    # Grid path, default bf16 MXU operands (fast path on v5e/v6e), loose tol.
    out_bf16 = qnn_forward(x_big, weights, biases, batch_tile=256)
    out_bf16 = jax.block_until_ready(out_bf16)
    assert out_bf16.shape == (big_batch, action_size)
    assert jnp.allclose(out_bf16, ref_big, atol=5e-2, rtol=5e-2), \
        "mismatch vs reference (large batch, bf16 MXU)"

    print("KERNEL_OK")
</pallas_src>

<mosaic_0001>
module attributes {stable_mosaic.version = 11 : i64} {
  func.func @_mlp_kernel(%arg0: memref<8x4xf32, #tpu.memory_space<vmem>>, %arg1: memref<4x128xf32, #tpu.memory_space<vmem>>, %arg2: memref<1x128xf32, #tpu.memory_space<vmem>>, %arg3: memref<128x128xf32, #tpu.memory_space<vmem>>, %arg4: memref<1x128xf32, #tpu.memory_space<vmem>>, %arg5: memref<128x3xf32, #tpu.memory_space<vmem>>, %arg6: memref<1x3xf32, #tpu.memory_space<vmem>>, %arg7: memref<8x3xf32, #tpu.memory_space<vmem>>) attributes {dimension_semantics = [], scalar_prefetch = 0 : i64, scratch_operands = 0 : i64, tpu.core_type = #tpu.core_type<tc>} {
    %c0 = arith.constant 0 : index
    %c0_0 = arith.constant 0 : index
    %0 = vector.load %arg0[%c0, %c0_0] : memref<8x4xf32, #tpu.memory_space<vmem>>, vector<8x4xf32>
    %c0_1 = arith.constant 0 : index
    %c0_2 = arith.constant 0 : index
    %1 = vector.load %arg1[%c0_1, %c0_2] : memref<4x128xf32, #tpu.memory_space<vmem>>, vector<4x128xf32>
    %c0_3 = arith.constant 0 : index
    %c0_4 = arith.constant 0 : index
    %2 = vector.load %arg2[%c0_3, %c0_4] : memref<1x128xf32, #tpu.memory_space<vmem>>, vector<1x128xf32>
    %cst = arith.constant dense<0.000000e+00> : vector<8x128xf32>
    %3 = tpu.matmul %0, %1, %cst {dimension_numbers = #tpu.dot_dimension_numbers<[1], [0], [0], [1], [0, 0, 1, 1], [], []>} : vector<8x4xf32>, vector<4x128xf32>, vector<8x128xf32> -> vector<8x128xf32>
    %4 = vector.broadcast %2 : vector<1x128xf32> to vector<8x128xf32>
    %5 = arith.addf %3, %4 : vector<8x128xf32>
    %cst_5 = arith.constant 0.000000e+00 : f32
    %6 = vector.broadcast %cst_5 : f32 to vector<8x128xf32>
    %7 = arith.maximumf %5, %6 : vector<8x128xf32>
    %c0_6 = arith.constant 0 : index
    %c0_7 = arith.constant 0 : index
    %8 = vector.load %arg3[%c0_6, %c0_7] : memref<128x128xf32, #tpu.memory_space<vmem>>, vector<128x128xf32>
    %c0_8 = arith.constant 0 : index
    %c0_9 = arith.constant 0 : index
    %9 = vector.load %arg4[%c0_8, %c0_9] : memref<1x128xf32, #tpu.memory_space<vmem>>, vector<1x128xf32>
    %cst_10 = arith.constant dense<0.000000e+00> : vector<8x128xf32>
    %10 = tpu.matmul %7, %8, %cst_10 {dimension_numbers = #tpu.dot_dimension_numbers<[1], [0], [0], [1], [0, 0, 1, 1], [], []>} : vector<8x128xf32>, vector<128x128xf32>, vector<8x128xf32> -> vector<8x128xf32>
    %11 = vector.broadcast %9 : vector<1x128xf32> to vector<8x128xf32>
    %12 = arith.addf %10, %11 : vector<8x128xf32>
    %cst_11 = arith.constant 0.000000e+00 : f32
    %13 = vector.broadcast %cst_11 : f32 to vector<8x128xf32>
    %14 = arith.maximumf %12, %13 : vector<8x128xf32>
    %c0_12 = arith.constant 0 : index
    %c0_13 = arith.constant 0 : index
    %15 = vector.load %arg5[%c0_12, %c0_13] : memref<128x3xf32, #tpu.memory_space<vmem>>, vector<128x3xf32>
    %c0_14 = arith.constant 0 : index
    %c0_15 = arith.constant 0 : index
    %16 = vector.load %arg6[%c0_14, %c0_15] : memref<1x3xf32, #tpu.memory_space<vmem>>, vector<1x3xf32>
    %cst_16 = arith.constant dense<0.000000e+00> : vector<8x3xf32>
    %17 = tpu.matmul %14, %15, %cst_16 {dimension_numbers = #tpu.dot_dimension_numbers<[1], [0], [0], [1], [0, 0, 1, 1], [], []>} : vector<8x128xf32>, vector<128x3xf32>, vector<8x3xf32> -> vector<8x3xf32>
    %18 = vector.broadcast %16 : vector<1x3xf32> to vector<8x3xf32>
    %19 = arith.addf %17, %18 : vector<8x3xf32>
    %c0_17 = arith.constant 0 : index
    %c0_18 = arith.constant 0 : index
    %20 = vector.load %arg7[%c0_17, %c0_18] : memref<8x3xf32, #tpu.memory_space<vmem>>, vector<8x3xf32>
    tpu.vector_store %arg7[%c0_17, %c0_18], %19 {strides = array<i32>} : memref<8x3xf32, #tpu.memory_space<vmem>>, vector<8x3xf32>,
    return
  }
}

</mosaic_0001>

<bundles_post_ra>
// kernel: tpu_custom_call.1
= control target key start
LH: loop header
LB: loop body
LE: loop exit
PB: predicated region body
PF: predicated region fallthrough
CT: control target
= control target key end

     0   :  { %vm39_vm0 = vcmask 1043456   ;;  %vm35_vm1 = vcmask 31744   ;;  %v425_v0 = vmov 0.0   ;;  %vm426_vm2 = vmmov 0   ;;  %s620_s1 = inlined_call_operand.vmem [shape: f32[4,128], index: 1, kind: input, shape index: {}]   ;;  %s621_s0 = inlined_call_operand.vmem [shape: f32[8,4], index: 0, kind: input, shape index: {}]   ;;  %s622_s3 = inlined_call_operand.vmem [shape: f32[128,128], index: 3, kind: input, shape index: {}]   ;;  %s623_s5 = inlined_call_operand.vmem [shape: f32[128,3], index: 5, kind: input, shape index: {}]   ;;  %s624_s2 = inlined_call_operand.vmem [shape: f32[1,128], index: 2, kind: input, shape index: {}]   ;;  %s625_s4 = inlined_call_operand.vmem [shape: f32[1,128], index: 4, kind: input, shape index: {}]   ;;  %s626_s6 = inlined_call_operand.vmem [shape: f32[1,3], index: 6, kind: input, shape index: {}]   ;;  %s627_s7 = inlined_call_operand.vmem [shape: f32[8,3], index: 7, kind: output, shape index: {}]  }
   0x1   :  { %348 = vmatprep.subr.mxu0 %v425_v0  ;;  %v27_v1 = vld [vmem:[%s620_s1] sm:$0xf]  ;;  %350 = vmatprep.mubr.msk.f32.mxu0 %vm426_vm2, %v425_v0  ;;  %v129_v3 = vld [vmem:[%s622_s3 + $0x78] sm:$0xff]  ;;  %v128_v4 = vld [vmem:[%s622_s3 + $0x70] sm:$0xff]  ;;  %vm301_vm3 = vcmask 23552  }
   0x2   :  { %v26_v2 = vld [vmem:[%s621_s0] sm:$0xff]  ;;  %349 = vmatpush3.msk.msra.mxu0 %vm39_vm0, %v27_v1  ;;  %353 = vmatprep.subr.mxu1 %v425_v0  ;;  %v127_v5 = vld [vmem:[%s622_s3 + $0x68] sm:$0xff]  ;;  %v125_v7 = vld [vmem:[%s622_s3 + $0x58] sm:$0xff] }
   0x3   :  { %351 = vmatmul.mubr.msk.f32.vlgmr.msra.gmra.mxu0 %vm35_vm1, %v26_v2  ;;  %354 = vmatpush3.msra.mxu1 %v129_v3  ;;  %v126_v6 = vld [vmem:[%s622_s3 + $0x60] sm:$0xff]  ;;  %v124_v8 = vld [vmem:[%s622_s3 + $0x50] sm:$0xff]  ;;  %v123_v9 = vld [vmem:[%s622_s3 + $0x48] sm:$0xff] }
   0x4   :  { %355 = vmatprep.subr.mxu1 %v425_v0  ;;  %385 = vmatprep.mubr.msk.f32.mxu1 %vm426_vm2, %v425_v0  ;;  %v122_v10 = vld [vmem:[%s622_s3 + $0x40] sm:$0xff]  ;;  %v121_v11 = vld [vmem:[%s622_s3 + $0x38] sm:$0xff]  ;;  %v120_v12 = vld [vmem:[%s622_s3 + $0x30] sm:$0xff] }
   0x5   :  { %356 = vmatpush3.msra.mxu1 %v128_v4  ;;  %388 = vmatprep.subr.mxu0 %v425_v0  ;;  %v119_v13 = vld [vmem:[%s622_s3 + $0x28] sm:$0xff]  ;;  %v118_v14 = vld [vmem:[%s622_s3 + $0x20] sm:$0xff]  ;;  %v117_v15 = vld [vmem:[%s622_s3 + $0x18] sm:$0xff] }
   0x6   :  { %357 = vmatprep.subr.mxu1 %v425_v0  ;;  %420 = vmatprep.mubr.msk.f32.mxu0 %vm426_vm2, %v425_v0  ;;  %v116_v16 = vld [vmem:[%s622_s3 + $0x10] sm:$0xff]  ;;  %v115_v17 = vld [vmem:[%s622_s3 + $0x8] sm:$0xff]  ;;  %v114_v18 = vld [vmem:[%s622_s3] sm:$0xff] }
   0x7   :  { %358 = vmatpush3.msra.mxu1 %v127_v5  ;;  %v223_v19 = vld [vmem:[%s623_s5 + $0x78] sm:$0xff]  ;;  %v222_v20 = vld [vmem:[%s623_s5 + $0x70] sm:$0xff]  ;;  %v221_v21 = vld [vmem:[%s623_s5 + $0x68] sm:$0xff] }
   0x8   :  { %359 = vmatprep.subr.mxu1 %v425_v0  ;;  %389 = vmatpush3.msra.mxu0 %v223_v19  ;;  %v220_v22 = vld [vmem:[%s623_s5 + $0x60] sm:$0xff]  ;;  %v219_v23 = vld [vmem:[%s623_s5 + $0x58] sm:$0xff]  ;;  %v218_v24 = vld [vmem:[%s623_s5 + $0x50] sm:$0xff] }
   0x9   :  { %360 = vmatpush3.msra.mxu1 %v126_v6  ;;  %390 = vmatprep.subr.mxu0 %v425_v0  ;;  %v217_v25 = vld [vmem:[%s623_s5 + $0x48] sm:$0xff]  ;;  %v216_v26 = vld [vmem:[%s623_s5 + $0x40] sm:$0xff]  ;;  %v215_v27 = vld [vmem:[%s623_s5 + $0x38] sm:$0xff] }
   0xa   :  { %361 = vmatprep.subr.mxu1 %v425_v0  ;;  %391 = vmatpush3.msra.mxu0 %v222_v20  ;;  %v214_v28 = vld [vmem:[%s623_s5 + $0x30] sm:$0xff]  ;;  %v213_v29 = vld [vmem:[%s623_s5 + $0x28] sm:$0xff]  ;;  %v212_v30 = vld [vmem:[%s623_s5 + $0x20] sm:$0xff] }
   0xb   :  { %362 = vmatpush3.msra.mxu1 %v125_v7  ;;  %392 = vmatprep.subr.mxu0 %v425_v0  ;;  %v211_v31 = vld [vmem:[%s623_s5 + $0x18] sm:$0xff]  ;;  %v307_v32 = vld [vmem:[%s624_s2] ss:$0 sm:$0xff]  ;;  %v210_v37 = vld [vmem:[%s623_s5 + $0x10] sm:$0xff] }
   0xc   :  { %363 = vmatprep.subr.mxu1 %v425_v0  ;;  %393 = vmatpush3.msra.mxu0 %v221_v21  ;;  %v209_v38 = vld [vmem:[%s623_s5 + $0x8] sm:$0xff]  ;;  %v208_v39 = vld [vmem:[%s623_s5] sm:$0xff] }
   0xd   :  { %364 = vmatpush3.msra.mxu1 %v124_v8  ;;  %394 = vmatprep.subr.mxu0 %v425_v0  ;;  %v310_v40 = vld [vmem:[%s625_s4] ss:$0 sm:$0xff] }
   0xe   :  { %365 = vmatprep.subr.mxu1 %v425_v0  ;;  %395 = vmatpush3.msra.mxu0 %v220_v22  ;;  %v311_v45 = vld [vmem:[%s626_s6] ss:$0 sm:$0xff] }
   0xf   :  { %366 = vmatpush3.msra.mxu1 %v123_v9  ;;  %396 = vmatprep.subr.mxu0 %v425_v0 }
  0x10   :  { %367 = vmatprep.subr.mxu1 %v425_v0  ;;  %397 = vmatpush3.msra.mxu0 %v219_v23 }
  0x11   :  { %368 = vmatpush3.msra.mxu1 %v122_v10  ;;  %398 = vmatprep.subr.mxu0 %v425_v0 }
  0x12   :  { %369 = vmatprep.subr.mxu1 %v425_v0  ;;  %399 = vmatpush3.msra.mxu0 %v218_v24 }
  0x13   :  { %370 = vmatpush3.msra.mxu1 %v121_v11  ;;  %400 = vmatprep.subr.mxu0 %v425_v0 }
  0x14   :  { %371 = vmatprep.subr.mxu1 %v425_v0  ;;  %401 = vmatpush3.msra.mxu0 %v217_v25 }
  0x15   :  { %372 = vmatpush3.msra.mxu1 %v120_v12  ;;  %402 = vmatprep.subr.mxu0 %v425_v0 }
  0x16   :  { %373 = vmatprep.subr.mxu1 %v425_v0  ;;  %403 = vmatpush3.msra.mxu0 %v216_v26 }
  0x17   :  { %374 = vmatpush3.msra.mxu1 %v119_v13  ;;  %404 = vmatprep.subr.mxu0 %v425_v0 }
  0x18   :  { %375 = vmatprep.subr.mxu1 %v425_v0  ;;  %405 = vmatpush3.msra.mxu0 %v215_v27 }
  0x19   :  { %376 = vmatpush3.msra.mxu1 %v118_v14  ;;  %406 = vmatprep.subr.mxu0 %v425_v0 }
  0x1a   :  { %377 = vmatprep.subr.mxu1 %v425_v0  ;;  %407 = vmatpush3.msra.mxu0 %v214_v28 }
  0x1b   :  { %378 = vmatpush3.msra.mxu1 %v117_v15  ;;  %408 = vmatprep.subr.mxu0 %v425_v0 }
  0x1c   :  { %379 = vmatprep.subr.mxu1 %v425_v0  ;;  %409 = vmatpush3.msra.mxu0 %v213_v29 }
  0x1d   :  { %380 = vmatpush3.msra.mxu1 %v116_v16  ;;  %410 = vmatprep.subr.mxu0 %v425_v0 }
  0x1e   :  { %381 = vmatprep.subr.mxu1 %v425_v0  ;;  %411 = vmatpush3.msra.mxu0 %v212_v30 }
  0x1f   :  { %382 = vmatpush3.msra.mxu1 %v115_v17  ;;  %412 = vmatprep.subr.mxu0 %v425_v0 }
  0x20   :  { %383 = vmatprep.subr.mxu1 %v425_v0  ;;  %413 = vmatpush3.msra.mxu0 %v211_v31 }
  0x21   :  { %384 = vmatpush3.msra.mxu1 %v114_v18  ;;  %414 = vmatprep.subr.mxu0 %v425_v0 }
  0x22   :  { %415 = vmatpush3.msra.mxu0 %v210_v37 }
  0x23   :  { %416 = vmatprep.subr.mxu0 %v425_v0 }
  0x24   :  { %417 = vmatpush3.msra.mxu0 %v209_v38 }
  0x25   :  { %418 = vmatprep.subr.mxu0 %v425_v0 }
  0x26   :  { %419 = vmatpush3.msra.mxu0 %v208_v39 }
  0xc3   :  { %v109_v33 = vpop.f32.mrf.mxu0 }
  0xc4   :  { %v110_v34 = vadd.f32 %v307_v32, %v109_v33 }
  0xc5   :  { %v352_v35 = vpop.f32.mrf.mxu0 }
  0xc6   :  { %v113_v36 = vmax.f32 %v110_v34, 0.0 }
  0xc8   :  { %386 = vmatmul.mubr.f32.vlgmr.msra.gmra.mxu1 %v113_v36 }
 0x188   :  { %v203_v41 = vpop.f32.mrf.mxu1 }
 0x189   :  { %v204_v42 = vadd.f32 %v310_v40, %v203_v41 }
 0x18a   :  { %v387_v43 = vpop.f32.mrf.mxu1 }
 0x18b   :  { %v207_v44 = vmax.f32 %v204_v42, 0.0 }
 0x18d   :  { %421 = vmatmul.mubr.f32.vlgmr.msra.gmra.mxu0 %v207_v44 }
 0x24d   :  { %v297_v46 = vpop.f32.mrf.mxu0 }
 0x24e   :  { %v298_v47 = vadd.f32 %v311_v45, %v297_v46 }
 0x24f   :  { %v422_v48 = vpop.f32.mrf.mxu0 }
 0x250   :  { %302 = vst.msk [vmem:[%s627_s7] sm:$0xff] %vm301_vm3, %v298_v47 }

</bundles_post_ra>
